<compile_context>
chip_gen: v6e
topology: v6e:2x2x1
jax: 0.10.0
libtpu: 0.0.40
codegen_flags: <defaults>
</compile_context>

<pallas_src>
import math
import numpy as np
import jax
import jax.numpy as jnp
from jax.experimental import pallas as pl
from jax.experimental.pallas import tpu as pltpu


# ---------------------------------------------------------------------------
# Deterministic parameter precompute (numpy, mirrors Delta/MLPG._precompute)
# ---------------------------------------------------------------------------
def _delta_window(seed):
    if not isinstance(seed[0], (tuple, list)):
        # TODO(synk): width-based (list[int]) regression-coefficient seeds not implemented.
        raise NotImplementedError("only list-of-lists delta coefficient seeds supported")
    rows = [[1.0]] + [list(map(float, c)) for c in seed]
    max_len = max(len(c) for c in rows)
    if max_len % 2 == 0:
        max_len += 1
    window = []
    for c in rows:
        diff = max_len - len(c)
        lp = diff // 2
        window.append([0.0] * lp + c + [0.0] * (diff - lp))
    return np.asarray(window, dtype=np.float64)


def mlpg_matrix(size, seed=((-0.5, 0, 0.5), (1, -2, 1))):
    """M = inv(W^T W) W^T, shape (T, T*H), computed in float64."""
    window = _delta_window(seed)                                        # (H, L)
    th = np.asarray([0] + [len(c) // 2 for c in seed], np.float64)[:, None]
    H, L = window.shape
    N = (L - 1) // 2
    T = int(size)
    W = np.zeros((T * H, T), dtype=np.float64)
    for t in range(T):
        hs, he = H * t, H * t + H
        ts, te = t - N, t - N + L
        if ts < 0:
            W[hs:he, :te] = window[:, -ts:] * (th <= t)
        elif T < te:
            W[hs:he, ts:] = window[:, : T - ts] * (th < T - t)
        else:
            W[hs:he, ts:te] = window
    WS = W.T                                # (T, T*H)
    M = np.linalg.solve(WS @ W, WS)         # solve > explicit inv for conditioning
    return np.asarray(M, dtype=np.float64), H


# ---------------------------------------------------------------------------
# Tile planning
# ---------------------------------------------------------------------------
_TM_CAP = 256                         # output-row tile cap (sublane-aligned)
_TN_CAP = 512                         # lane-dense output-column tile cap
_VMEM_TILE_BUDGET = 20 * 1024 * 1024  # double-buffered operand + output tiles
_VMEM_LIMIT_BYTES = 32 * 1024 * 1024  # scoped VMEM (raises v5e's 16 MiB default)


def _round_up(x, m):
    return ((x + m - 1) // m) * m


def _balanced_tile(dim, cap, align):
    """Aligned tile size <= cap that minimizes padding waste of `dim`."""
    dim_a = _round_up(max(int(dim), 1), align)
    cap_a = max(align, (int(cap) // align) * align)
    if dim_a <= cap_a:
        return dim_a
    n_tiles = math.ceil(dim_a / cap_a)
    return _round_up(math.ceil(dim_a / n_tiles), align)


def _is_v7x():
    try:
        return "v7" in jax.devices()[0].device_kind.lower()
    except Exception:
        return False


def mlpg_prepare(size, seed=((-0.5, 0, 0.5), (1, -2, 1)),
                 operand_dtype=jnp.bfloat16):
    """One-time precompute: M, its padded/cast operand copy, and tile plan."""
    M64, H = mlpg_matrix(size, seed)
    T = int(size)
    TH = T * H
    op_dtype = np.dtype(operand_dtype)
    ob = op_dtype.itemsize

    tm = _balanced_tile(T, _TM_CAP, 8)
    # Raise tk toward full TH (ideally the k grid collapses to 1) under the
    # VMEM tile budget: 2*tm*tk*ob + 2*tk*tn*ob + 2*tm*tn*4 <= budget.
    tk_cap = (_VMEM_TILE_BUDGET - 2 * tm * _TN_CAP * 4) // (2 * (tm + _TN_CAP) * ob)
    tk_cap = max(128, (tk_cap // 128) * 128)
    tk = _balanced_tile(TH, tk_cap, 128)

    Tp = _round_up(T, tm)
    THp = _round_up(TH, tk)

    # Pad + cast M ONCE (hoisted out of the per-call path).  Zero K columns
    # contribute nothing; extra output rows are sliced off after the GEMM.
    M_p = jnp.asarray(np.pad(M64, ((0, Tp - T), (0, THp - TH))), dtype=op_dtype)

    return {
        "M": jnp.asarray(M64, dtype=jnp.float32),   # unpadded f32 (reference use)
        "M_p": M_p,
        "H": H, "T": T, "TH": TH, "Tp": Tp, "THp": THp,
        "tm": tm, "tk": tk,
        "operand_dtype": op_dtype,
    }


# ---------------------------------------------------------------------------
# Pallas kernels: tiled GEMM  out = M @ U   (M: (T, TH), U: (TH, B*D))
# ---------------------------------------------------------------------------
def _mlpg_gemm_kernel(m_ref, u_ref, o_ref):
    # k-reduction accumulates directly into the resident f32 output tile.
    @pl.when(pl.program_id(2) == 0)
    def _():
        o_ref[...] = jnp.zeros_like(o_ref)

    o_ref[...] += jnp.dot(m_ref[...], u_ref[...],
                          preferred_element_type=jnp.float32)


def _mlpg_gemm_kernel_single_k(m_ref, u_ref, o_ref):
    # k grid collapsed to one step: write the product directly, no init pass.
    o_ref[...] = jnp.dot(m_ref[...], u_ref[...],
                         preferred_element_type=jnp.float32)


def mlpg_forward(u, params):
    """u: (..., T, D*H) -> (..., T, D).  Hot GEMM runs in the Pallas kernel."""
    H, T, TH = params["H"], params["T"], params["TH"]
    Tp, THp = params["Tp"], params["THp"]
    tm, tk = params["tm"], params["tk"]
    op_dtype = params["operand_dtype"]
    M_p = params["M_p"]

    *lead, Tin, DH = u.shape
    assert Tin == T, "length of input must match the precomputed size"
    assert DH % H == 0, "last dim must be D*H"
    D = DH // H
    B = int(np.prod(lead)) if lead else 1
    BD = B * D
    out_dtype = u.dtype

    # Cast to the operand dtype BEFORE the batch-folding transpose/pad so the
    # staging pass over the largest tensor is half-width in bf16.
    u_op = u.astype(op_dtype)
    U = jnp.transpose(u_op.reshape(B, TH, D), (1, 0, 2)).reshape(TH, BD)

    tn = _balanced_tile(BD, _TN_CAP, 128)
    BDp = _round_up(BD, tn)

    grid_i, grid_n, grid_k = Tp // tm, BDp // tn, THp // tk
    # v7x has 2 TensorCores: ensure the parallel (i, n) grid has >= 2 tiles.
    if _is_v7x() and grid_i * grid_n == 1:
        if tn >= 256:
            tn //= 2
            grid_n = BDp // tn
        elif tm % 16 == 0:
            tm //= 2
            grid_i = Tp // tm

    U_p = jnp.pad(U, ((0, THp - TH), (0, BDp - BD)))

    ob = op_dtype.itemsize
    cost = pl.CostEstimate(
        flops=2 * Tp * THp * BDp,
        transcendentals=0,
        bytes_accessed=ob * (Tp * THp + THp * BDp) + 4 * Tp * BDp,
    )

    kernel = _mlpg_gemm_kernel_single_k if grid_k == 1 else _mlpg_gemm_kernel

    out_p = pl.pallas_call(
        kernel,
        out_shape=jax.ShapeDtypeStruct((Tp, BDp), jnp.float32),
        grid_spec=pltpu.PrefetchScalarGridSpec(
            num_scalar_prefetch=0,
            grid=(grid_i, grid_n, grid_k),
            in_specs=[
                pl.BlockSpec((tm, tk), lambda i, n, k: (i, k)),   # M tile
                pl.BlockSpec((tk, tn), lambda i, n, k: (k, n)),   # U tile
            ],
            out_specs=pl.BlockSpec((tm, tn), lambda i, n, k: (i, n)),
        ),
        compiler_params=pltpu.CompilerParams(
            dimension_semantics=("parallel", "parallel", "arbitrary"),
            vmem_limit_bytes=_VMEM_LIMIT_BYTES,
        ),
        cost_estimate=cost,
    )(M_p, U_p)

    out = out_p[:T, :BD].reshape(T, B, D).transpose(1, 0, 2)   # (B, T, D)
    return out.reshape(*lead, T, D).astype(out_dtype)


# ---------------------------------------------------------------------------
if __name__ == "__main__":
    # Small shapes: batch=2, T=8, D=4, H=3  =>  u: (2, 8, 12)
    T = 8
    D = 4
    seed_coeffs = [[-0.5, 0, 0.5], [1, -2, 1]]

    params_bf16 = mlpg_prepare(T, seed_coeffs, operand_dtype=jnp.bfloat16)  # default fast path
    params_f32 = mlpg_prepare(T, seed_coeffs, operand_dtype=jnp.float32)    # full-precision path
    H = params_bf16["H"]

    key = jax.random.PRNGKey(0)
    u = jax.random.normal(key, (2, T, D * H), dtype=jnp.float32)

    # --- f32-operand path vs f32 einsum reference (tight tolerance).
    out_f32 = jax.block_until_ready(mlpg_forward(u, params_f32))
    ref_f32 = jnp.einsum("Bkd,tk->Btd", u.reshape(2, T * H, D), params_f32["M"])
    assert out_f32.shape == (2, T, D)
    assert np.allclose(np.asarray(out_f32), np.asarray(ref_f32), atol=1e-4, rtol=1e-4)

    # --- bf16-operand default path vs reference on identically-rounded operands.
    out_bf16 = jax.block_until_ready(mlpg_forward(u, params_bf16))
    M_bf = params_bf16["M_p"][:T, : T * H].astype(jnp.float32)
    u_bf = u.astype(jnp.bfloat16).astype(jnp.float32)
    ref_bf = jnp.einsum("Bkd,tk->Btd", u_bf.reshape(2, T * H, D), M_bf)
    assert out_bf16.shape == (2, T, D)
    assert np.allclose(np.asarray(out_bf16), np.asarray(ref_bf), atol=1e-3, rtol=1e-3)

    # --- Extra leading dims exercise the batch-folding reshape path.
    key2 = jax.random.PRNGKey(1)
    u2 = jax.random.normal(key2, (2, 3, T, D * H), dtype=jnp.float32)
    out2 = jax.block_until_ready(mlpg_forward(u2, params_f32))
    ref2 = jnp.einsum("abkd,tk->abtd", u2.reshape(2, 3, T * H, D), params_f32["M"])
    assert out2.shape == (2, 3, T, D)
    assert np.allclose(np.asarray(out2), np.asarray(ref2), atol=1e-4, rtol=1e-4)

    print("KERNEL_OK")
</pallas_src>

<mosaic_0001>
module attributes {stable_mosaic.version = 11 : i64} {
  func.func @_mlpg_gemm_kernel_single_k(%arg0: i32, %arg1: i32, %arg2: i32, %arg3: memref<8x128xf32, #tpu.memory_space<vmem>>, %arg4: memref<128x128xf32, #tpu.memory_space<vmem>>, %arg5: memref<8x128xf32, #tpu.memory_space<vmem>>) attributes {dimension_semantics = [#tpu.dimension_semantics<parallel>, #tpu.dimension_semantics<parallel>, #tpu.dimension_semantics<arbitrary>], iteration_bounds = array<i64: 1, 1, 1>, scalar_prefetch = 0 : i64, scratch_operands = 0 : i64, tpu.core_type = #tpu.core_type<tc>, window_params = [{transform_indices = @transform_0, window_bounds = array<i64: 8, 128>}, {transform_indices = @transform_1, window_bounds = array<i64: 128, 128>}, {transform_indices = @transform_2, window_bounds = array<i64: 8, 128>}]} {
    %c0 = arith.constant 0 : index
    %c0_0 = arith.constant 0 : index
    %0 = vector.load %arg3[%c0, %c0_0] : memref<8x128xf32, #tpu.memory_space<vmem>>, vector<8x128xf32>
    %c0_1 = arith.constant 0 : index
    %c0_2 = arith.constant 0 : index
    %1 = vector.load %arg4[%c0_1, %c0_2] : memref<128x128xf32, #tpu.memory_space<vmem>>, vector<128x128xf32>
    %cst = arith.constant dense<0.000000e+00> : vector<8x128xf32>
    %2 = tpu.matmul %0, %1, %cst {dimension_numbers = #tpu.dot_dimension_numbers<[1], [0], [0], [1], [0, 0, 1, 1], [], []>} : vector<8x128xf32>, vector<128x128xf32>, vector<8x128xf32> -> vector<8x128xf32>
    %c0_3 = arith.constant 0 : index
    %c0_4 = arith.constant 0 : index
    %3 = vector.load %arg5[%c0_3, %c0_4] : memref<8x128xf32, #tpu.memory_space<vmem>>, vector<8x128xf32>
    tpu.vector_store %arg5[%c0_3, %c0_4], %2 {strides = array<i32>} : memref<8x128xf32, #tpu.memory_space<vmem>>, vector<8x128xf32>,
    return
  }
  func.func @transform_0(%arg0: i32, %arg1: i32, %arg2: i32) -> (i32, i32) {
    %c0_i32 = arith.constant 0 : i32
    return %arg0, %arg2 : i32, i32
  }
  func.func @transform_1(%arg0: i32, %arg1: i32, %arg2: i32) -> (i32, i32) {
    %c0_i32 = arith.constant 0 : i32
    return %arg2, %arg1 : i32, i32
  }
  func.func @transform_2(%arg0: i32, %arg1: i32, %arg2: i32) -> (i32, i32) {
    %c0_i32 = arith.constant 0 : i32
    return %arg0, %arg1 : i32, i32
  }
}

</mosaic_0001>

<bundles_post_ra>
// kernel: tpu_custom_call.1
= control target key start
LH: loop header
LB: loop body
LE: loop exit
PB: predicated region body
PF: predicated region fallthrough
CT: control target
= control target key end

     0   :  { %7 = vsyncpa [#allocation3], 0  ;;  %s298_s0 = inlined_call_operand.hbm [shape: f32[8,128], index: 0, kind: input, shape index: {}]   ;;  %s299_s1 = inlined_call_operand.hbm [shape: f32[128,128], index: 1, kind: input, shape index: {}]   ;;  %s300_s2 = inlined_call_operand.hbm [shape: f32[8,128], index: 2, kind: output, shape index: {}]  }
   0x1   :  { %8 = vsyncpa [#allocation6], 0 }
   0x2   :  { %9 = vsyncpa [#allocation4], 0  ;;  %s267_s9 = smov [#allocation2]   ;;  %s268_s11 = smov [#allocation5]  }
   0x3   :  { %s16_s10 = sshll.u32 %s267_s9, 4  ;;  %s25_s12 = sshll.u32 %s268_s11, 4  ;;  %s17_s10 = int_to_ptr.vmem [resolvable:$true] %s16_s10  ;;  %s26_s12 = int_to_ptr.vmem [resolvable:$true] %s25_s12 }
   0x4   :  { %s209_s13 = scalar_lea.vmem %s17_s10, 128  ;;  %p214_p1 = scmp.lt.s32.totalorder %s17_s10, %s17_s10 }
   0x5   :  { %p210_p0 = scmp.ne.s32.totalorder %s17_s10, %s209_s13  ;;  %p215_p2 = scmp.lt.s32.totalorder %s209_s13, %s209_s13 }
   0x7   :  { %p216_p3 = por %p215_p2, %p214_p1 }
   0x9   :  { %p217_p4 = pnand %p216_p3, %p210_p0 }
   0xb   :  { %220 = shalt.err (!%p217_p4)
}
   0xc   :  { %19 = dma.hbm_to_vmem [thread:$0]  %s298_s0, 128, %s17_s10, [#allocation3]  }
   0xd   :  { %s229_s16 = scalar_lea.vmem %s26_s12, 2048  ;;  %p234_p6 = scmp.lt.s32.totalorder %s26_s12, %s26_s12 }
   0xe   :  { %p230_p5 = scmp.ne.s32.totalorder %s26_s12, %s229_s16  ;;  %p235_p7 = scmp.lt.s32.totalorder %s229_s16, %s229_s16 }
  0x10   :  { %p236_p8 = por %p235_p7, %p234_p6 }
  0x12   :  { %p237_p9 = pnand %p236_p8, %p230_p5 }
  0x14   :  { %240 = shalt.err (!%p237_p9)
}
  0x15   :  { %s269_s17 = smov 128   ;;  %s270_s18 = smov 8  }
  0x16   :  { %31 = dma.hbm_to_vmem [thread:$0]  %s299_s1, 2048, %s26_s12, [#allocation6], %s269_s17, %s269_s17, %s270_s18  }
  0x17   :  { %261 = dma.done.wait [#allocation3], 128  }
  0x18   :  { %262 = vsyncadd [#allocation3], 4294967168 }
  0x19   :  { %263 = dma.done.wait [#allocation6], 2048  }
  0x1a   :  { %264 = vsyncadd [#allocation6], 4294965248  ;;  %v271_v0 = vmov 0.0   ;;  %vm272_vm0 = vmmov 0   ;;  %v54_v1 = vld [vmem:[#allocation5 + $0x78] sm:$0xff]  ;;  %v53_v2 = vld [vmem:[#allocation5 + $0x70] sm:$0xff] }
  0x1b   :  { %159 = vmatprep.subr.mxu0 %v271_v0  ;;  %191 = vmatprep.mubr.msk.f32.mxu0 %vm272_vm0, %v271_v0  ;;  %v52_v3 = vld [vmem:[#allocation5 + $0x68] sm:$0xff]  ;;  %v51_v4 = vld [vmem:[#allocation5 + $0x60] sm:$0xff]  ;;  %v50_v5 = vld [vmem:[#allocation5 + $0x58] sm:$0xff]  ;;  %s273_s0 = smov [#allocation7]  }
  0x1c   :  { %160 = vmatpush3.msra.mxu0 %v54_v1  ;;  %v49_v6 = vld [vmem:[#allocation5 + $0x50] sm:$0xff]  ;;  %v48_v7 = vld [vmem:[#allocation5 + $0x48] sm:$0xff]  ;;  %v47_v8 = vld [vmem:[#allocation5 + $0x40] sm:$0xff]  ;;  %s132_s1 = sshll.u32 %s273_s0, 4  ;;  %s133_s1 = int_to_ptr.vmem [resolvable:$true] %s132_s1 }
  0x1d   :  { %161 = vmatprep.subr.mxu0 %v271_v0  ;;  %v46_v9 = vld [vmem:[#allocation5 + $0x38] sm:$0xff]  ;;  %v45_v10 = vld [vmem:[#allocation5 + $0x30] sm:$0xff]  ;;  %v44_v11 = vld [vmem:[#allocation5 + $0x28] sm:$0xff]  ;;  %s241_s21 = scalar_lea.vmem %s133_s1, 128  ;;  %p246_p11 = scmp.lt.s32.totalorder %s133_s1, %s133_s1 }
  0x1e   :  { %162 = vmatpush3.msra.mxu0 %v53_v2  ;;  %v43_v12 = vld [vmem:[#allocation5 + $0x20] sm:$0xff]  ;;  %v42_v13 = vld [vmem:[#allocation5 + $0x18] sm:$0xff]  ;;  %v41_v14 = vld [vmem:[#allocation5 + $0x10] sm:$0xff]  ;;  %p242_p10 = scmp.ne.s32.totalorder %s133_s1, %s241_s21  ;;  %p247_p12 = scmp.lt.s32.totalorder %s241_s21, %s241_s21 }
  0x1f   :  { %163 = vmatprep.subr.mxu0 %v271_v0  ;;  %v40_v15 = vld [vmem:[#allocation5 + $0x8] sm:$0xff]  ;;  %v39_v16 = vld [vmem:[#allocation5] sm:$0xff]  ;;  %v38_v17 = vld [vmem:[#allocation2] sm:$0xff] }
  0x20   :  { %164 = vmatpush3.msra.mxu0 %v52_v3  ;;  %p248_p13 = por %p247_p12, %p246_p11 }
  0x21   :  { %165 = vmatprep.subr.mxu0 %v271_v0 }
  0x22   :  { %166 = vmatpush3.msra.mxu0 %v51_v4  ;;  %p249_p0 = pnand %p248_p13, %p242_p10 }
  0x23   :  { %167 = vmatprep.subr.mxu0 %v271_v0 }
  0x24   :  { %168 = vmatpush3.msra.mxu0 %v50_v5 }
  0x25   :  { %169 = vmatprep.subr.mxu0 %v271_v0 }
  0x26   :  { %170 = vmatpush3.msra.mxu0 %v49_v6 }
  0x27   :  { %171 = vmatprep.subr.mxu0 %v271_v0 }
  0x28   :  { %172 = vmatpush3.msra.mxu0 %v48_v7 }
  0x29   :  { %173 = vmatprep.subr.mxu0 %v271_v0 }
  0x2a   :  { %174 = vmatpush3.msra.mxu0 %v47_v8 }
  0x2b   :  { %175 = vmatprep.subr.mxu0 %v271_v0 }
  0x2c   :  { %176 = vmatpush3.msra.mxu0 %v46_v9 }
  0x2d   :  { %177 = vmatprep.subr.mxu0 %v271_v0 }
  0x2e   :  { %178 = vmatpush3.msra.mxu0 %v45_v10 }
  0x2f   :  { %179 = vmatprep.subr.mxu0 %v271_v0 }
  0x30   :  { %180 = vmatpush3.msra.mxu0 %v44_v11 }
  0x31   :  { %181 = vmatprep.subr.mxu0 %v271_v0 }
  0x32   :  { %182 = vmatpush3.msra.mxu0 %v43_v12 }
  0x33   :  { %183 = vmatprep.subr.mxu0 %v271_v0 }
  0x34   :  { %184 = vmatpush3.msra.mxu0 %v42_v13 }
  0x35   :  { %185 = vmatprep.subr.mxu0 %v271_v0 }
  0x36   :  { %186 = vmatpush3.msra.mxu0 %v41_v14 }
  0x37   :  { %187 = vmatprep.subr.mxu0 %v271_v0 }
  0x38   :  { %188 = vmatpush3.msra.mxu0 %v40_v15 }
  0x39   :  { %189 = vmatprep.subr.mxu0 %v271_v0 }
  0x3a   :  { %190 = vmatpush3.msra.mxu0 %v39_v16 }
  0x3b   :  { %192 = vmatmul.mubr.f32.vlgmr.msra.gmra.mxu0 %v38_v17 }
  0xfb   :  { %v121_v18 = vpop.f32.mrf.mxu0 }
  0xfc   :  { %125 = vst [vmem:[#allocation7] sm:$0xff] %v121_v18 }
  0xfd   :  { %v193_v19 = vpop.f32.mrf.mxu0 }
  0xfe   :  { %252 = shalt.err (!%p249_p0)
}
  0xff   :  { %135 = dma.vmem_to_hbm [thread:$0]  %s133_s1, 128, %s300_s2, [#allocation4]  }
 0x100   :  { %265 = dma.done.wait [#allocation4], 128  }
 0x101   :  { %266 = vsyncadd [#allocation4], 4294967168 }
 0x102   :  { %139 = vsyncpa [#allocation3], 1 }
 0x103   :  { %140 = vsyncpa [#allocation6], 1 }
 0x104   :  { %141 = vsyncpa [#allocation4], 1 }

</bundles_post_ra>
